<compile_context>
chip_gen: v5e
topology: v5e:2x2
jax: 0.10.0
libtpu: 0.0.40
codegen_flags: <defaults>
</compile_context>

<pallas_src>
import functools

import jax
import jax.numpy as jnp
from jax import lax
from jax.experimental import pallas as pl
from jax.experimental.pallas import tpu as pltpu


def _layernorm(v, w, b, eps=1e-5):
    mu = jnp.mean(v, axis=-1, keepdims=True)
    var = jnp.mean((v - mu) ** 2, axis=-1, keepdims=True)
    return (v - mu) * lax.rsqrt(var + eps) * w + b


def _pick_tile(total, candidates):
    """Largest candidate that strictly tiles `total`; else the full extent."""
    for c in candidates:
        if total > c and total % c == 0:
            return c
    return total


def encoder_kernel(x_ref, ln1_w_ref, ln1_b_ref, wqkv_ref, bqkv_ref,
                   ln2_w_ref, ln2_b_ref, w1_ref, b1_ref, w2_ref, b2_ref,
                   out_ref, *, num_heads, kv_tile, f_tile):
    # One grid step == one batch element; the whole (S, H) slab lives in VMEM.
    x = x_ref[0].astype(jnp.float32)                       # (S, H)
    S, H = x.shape
    hd = H // num_heads

    # ---- pre-LN + fused QKV projection (bf16 operands, f32 accumulation) ----
    xn = _layernorm(x, ln1_w_ref[...], ln1_b_ref[...])
    qkv = jnp.dot(xn.astype(jnp.bfloat16), wqkv_ref[...],
                  preferred_element_type=jnp.float32) + bqkv_ref[...]   # (S, 3H) f32
    qkv_bf = qkv.astype(jnp.bfloat16)        # single cast; Q already pre-scaled

    def to_heads(a):                          # (S, H) -> (num_heads, S, hd)
        return a.reshape(S, num_heads, hd).swapaxes(0, 1)

    q = to_heads(qkv_bf[:, :H])
    k = to_heads(qkv_bf[:, H:2 * H])
    v = to_heads(qkv_bf[:, 2 * H:])

    # ---- head-batched attention with online softmax over KV tiles ----
    n_kv = S // kv_tile
    m = l = acc = None
    for t in range(n_kv):                     # static loop (n_kv known at trace)
        sl = slice(t * kv_tile, (t + 1) * kv_tile)
        s = jnp.einsum('hqd,hkd->hqk', q, k[:, sl, :],
                       preferred_element_type=jnp.float32)      # (nh, S, kv_tile)
        tile_max = jnp.max(s, axis=-1, keepdims=True)
        m_new = tile_max if t == 0 else jnp.maximum(m, tile_max)
        p = jnp.exp(s - m_new)
        psum = jnp.sum(p, axis=-1, keepdims=True)
        pv = jnp.einsum('hqk,hkd->hqd', p.astype(jnp.bfloat16), v[:, sl, :],
                        preferred_element_type=jnp.float32)     # (nh, S, hd)
        if t == 0:
            l, acc = psum, pv
        else:
            alpha = jnp.exp(m - m_new)
            l = alpha * l + psum
            acc = alpha * acc + pv
        m = m_new

    ctx = acc * pl.reciprocal(l, approx=True)                   # (nh, S, hd)
    attn = ctx.swapaxes(0, 1).reshape(S, H)                     # lane-dense slab

    x = x + attn                                                # residual 1

    # ---- pre-LN + MLP, tiled over F (f32 accumulator) ----
    xn2 = _layernorm(x, ln2_w_ref[...], ln2_b_ref[...]).astype(jnp.bfloat16)
    F = w1_ref.shape[-1]
    n_ft = F // f_tile
    h2 = jnp.zeros((S, H), jnp.float32)
    for t in range(n_ft):                     # static loop
        sl = slice(t * f_tile, (t + 1) * f_tile)
        h1 = jnp.dot(xn2, w1_ref[:, sl],
                     preferred_element_type=jnp.float32) + b1_ref[:, sl]
        h1 = jnp.maximum(h1, 0.0)             # relu activation
        h2 = h2 + jnp.dot(h1.astype(jnp.bfloat16), w2_ref[sl, :],
                          preferred_element_type=jnp.float32)

    out_ref[0] = (x + h2 + b2_ref[...]).astype(out_ref.dtype)   # residual 2


def transformer_encoder(x, params, num_heads):
    B, S, H = x.shape
    F = params["w1"].shape[-1]
    assert H % num_heads == 0, "hidden_dim must be divisible by num_heads"
    hd = H // num_heads

    # Fold the 1/sqrt(hd) attention scale into the Q columns of wqkv/bqkv
    # (one-time weight transform, fused with the bf16 cast).
    q_scale = jnp.concatenate([jnp.full((H,), hd ** -0.5, jnp.float32),
                               jnp.ones((2 * H,), jnp.float32)])
    wqkv = (params["wqkv"] * q_scale).astype(jnp.bfloat16)
    bqkv = params["bqkv"] * q_scale                      # stays f32
    w1 = params["w1"].astype(jnp.bfloat16)
    w2 = params["w2"].astype(jnp.bfloat16)

    kv_tile = _pick_tile(S, (512, 256, 128, 64))
    f_tile = _pick_tile(F, (512, 256))

    # VMEM budget: ~3/4 of physical per-core VMEM (≈48 MiB v7x, ≈96 MiB v5e/v6e).
    try:
        vmem_cap = pltpu.get_tpu_info().vmem_capacity_bytes
    except Exception:
        vmem_cap = 64 * 1024 * 1024
    vmem_limit = max(32 * 1024 * 1024,
                     min(int(vmem_cap) * 3 // 4, 100 * 1024 * 1024))

    full2d = lambda shape: pl.BlockSpec(shape, lambda b: (0, 0))

    # Advisory cost estimate for XLA scheduling around the custom call.
    flops = B * (6 * S * H * H + 4 * S * S * H + 4 * S * H * F)
    transcendentals = B * (num_heads * S * S + num_heads * S + 2 * S)
    bytes_accessed = (2 * B * S * H * 4                 # x in + out (f32)
                      + (3 * H * H + 2 * H * F) * 2     # bf16 weights
                      + (3 * H + F + 6 * H) * 4)        # biases + LN params (f32)

    return pl.pallas_call(
        functools.partial(encoder_kernel, num_heads=num_heads,
                          kv_tile=kv_tile, f_tile=f_tile),
        out_shape=jax.ShapeDtypeStruct((B, S, H), x.dtype),
        grid_spec=pltpu.PrefetchScalarGridSpec(
            num_scalar_prefetch=0,
            grid=(B,),
            in_specs=[
                pl.BlockSpec((1, S, H), lambda b: (b, 0, 0)),   # x
                full2d((1, H)),        # ln1 weight
                full2d((1, H)),        # ln1 bias
                full2d((H, 3 * H)),    # w_qkv (bf16, Q pre-scaled)
                full2d((1, 3 * H)),    # b_qkv (f32, Q pre-scaled)
                full2d((1, H)),        # ln2 weight
                full2d((1, H)),        # ln2 bias
                full2d((H, F)),        # mlp_1 weight (bf16)
                full2d((1, F)),        # mlp_1 bias
                full2d((F, H)),        # mlp_2 weight (bf16)
                full2d((1, H)),        # mlp_2 bias
            ],
            out_specs=pl.BlockSpec((1, S, H), lambda b: (b, 0, 0)),
        ),
        compiler_params=pltpu.CompilerParams(
            dimension_semantics=("parallel",),
            vmem_limit_bytes=vmem_limit),
        cost_estimate=pl.CostEstimate(
            flops=flops, transcendentals=transcendentals,
            bytes_accessed=bytes_accessed),
    )(x, params["ln1_w"], params["ln1_b"], wqkv, bqkv,
      params["ln2_w"], params["ln2_b"], w1, params["b1"],
      w2, params["b2"])


def xavier_uniform(key, shape, gain):
    fan_in, fan_out = shape
    limit = gain * jnp.sqrt(6.0 / (fan_in + fan_out))
    return jax.random.uniform(key, shape, jnp.float32, -limit, limit)


def make_params(key, hidden_dim, fc_dim):
    k1, k2, k3, k4, k5, k6 = jax.random.split(key, 6)
    return {
        "ln1_w": jnp.ones((1, hidden_dim), jnp.float32),
        "ln1_b": jnp.zeros((1, hidden_dim), jnp.float32),
        "wqkv": xavier_uniform(k1, (hidden_dim, 3 * hidden_dim), 1.414),
        "bqkv": 0.01 * jax.random.normal(k2, (1, 3 * hidden_dim), jnp.float32),
        "ln2_w": jnp.ones((1, hidden_dim), jnp.float32),
        "ln2_b": jnp.zeros((1, hidden_dim), jnp.float32),
        "w1": xavier_uniform(k3, (hidden_dim, fc_dim), 1.414),
        "b1": 0.01 * jax.random.normal(k4, (1, fc_dim), jnp.float32),
        "w2": xavier_uniform(k5, (fc_dim, hidden_dim), 1.414),
        "b2": 0.01 * jax.random.normal(k6, (1, hidden_dim), jnp.float32),
    }


def reference(x, p, num_heads):
    # Plain-JAX f32 mirror of the PyTorch forward (eval mode, dropout = identity).
    def ln(v, w, b):
        mu = v.mean(-1, keepdims=True)
        var = ((v - mu) ** 2).mean(-1, keepdims=True)
        return (v - mu) / jnp.sqrt(var + 1e-5) * w + b

    B, S, H = x.shape
    hd = H // num_heads
    xn = ln(x, p["ln1_w"], p["ln1_b"])
    qkv = xn @ p["wqkv"] + p["bqkv"]
    Q, K, V = jnp.split(qkv, 3, axis=-1)
    Q = Q.reshape(B, S, num_heads, hd).transpose(0, 2, 1, 3)
    K = K.reshape(B, S, num_heads, hd).transpose(0, 2, 1, 3)
    V = V.reshape(B, S, num_heads, hd).transpose(0, 2, 1, 3)
    A = jax.nn.softmax(Q @ jnp.swapaxes(K, -1, -2) / hd ** 0.5, axis=-1)
    attn = (A @ V).transpose(0, 2, 1, 3).reshape(B, S, H)
    x = x + attn
    xn2 = ln(x, p["ln2_w"], p["ln2_b"])
    h = jnp.maximum(xn2 @ p["w1"] + p["b1"], 0.0)
    return x + (h @ p["w2"] + p["b2"])


if __name__ == "__main__":
    key = jax.random.PRNGKey(0)
    kx, kp, kx2, kp2 = jax.random.split(key, 4)

    # --- small smoke test (toy shapes, single KV / F tile) ---
    B, S, HIDDEN, FC, NUM_HEADS = 2, 8, 32, 64, 4
    x = jax.random.normal(kx, (B, S, HIDDEN), jnp.float32)
    params = make_params(kp, HIDDEN, FC)
    out = jax.block_until_ready(transformer_encoder(x, params, NUM_HEADS))
    ref = reference(x, params, NUM_HEADS)
    assert out.shape == (B, S, HIDDEN)
    # Tolerance accounts for bf16 MXU operands + approx reciprocal vs f32 reference.
    assert jnp.allclose(out, ref, rtol=5e-2, atol=5e-2), "small-shape mismatch"

    # --- multi-(8,128)-tile check: exercises KV-tiled online softmax and
    #     F-tiled MLP paths at a DETR-like head/hidden configuration ---
    B2, S2, H2, F2, NH2 = 2, 128, 256, 512, 8
    x2 = jax.random.normal(kx2, (B2, S2, H2), jnp.float32)
    params2 = make_params(kp2, H2, F2)
    out2 = jax.block_until_ready(transformer_encoder(x2, params2, NH2))
    ref2 = reference(x2, params2, NH2)
    # Looser tolerance: larger contractions accumulate bf16 rounding error.
    assert jnp.allclose(out2, ref2, rtol=1e-1, atol=1e-1), "tiled-shape mismatch"

    print("KERNEL_OK")
</pallas_src>

<mosaic_0001>
module attributes {stable_mosaic.version = 11 : i64} {
  func.func @encoder_kernel(%arg0: i32, %arg1: memref<1x8x32xf32, #tpu.memory_space<vmem>>, %arg2: memref<1x32xf32, #tpu.memory_space<vmem>>, %arg3: memref<1x32xf32, #tpu.memory_space<vmem>>, %arg4: memref<32x96xbf16, #tpu.memory_space<vmem>>, %arg5: memref<1x96xf32, #tpu.memory_space<vmem>>, %arg6: memref<1x32xf32, #tpu.memory_space<vmem>>, %arg7: memref<1x32xf32, #tpu.memory_space<vmem>>, %arg8: memref<32x64xbf16, #tpu.memory_space<vmem>>, %arg9: memref<1x64xf32, #tpu.memory_space<vmem>>, %arg10: memref<64x32xbf16, #tpu.memory_space<vmem>>, %arg11: memref<1x32xf32, #tpu.memory_space<vmem>>, %arg12: memref<1x8x32xf32, #tpu.memory_space<vmem>>) attributes {dimension_semantics = [#tpu.dimension_semantics<parallel>], iteration_bounds = array<i64: 2>, scalar_prefetch = 0 : i64, scratch_operands = 0 : i64, tpu.core_type = #tpu.core_type<tc>, window_params = [{transform_indices = @transform_0, window_bounds = array<i64: 1, 8, 32>}, {pipeline_mode = #tpu.pipeline_mode<synchronous>, transform_indices = @transform_1, window_bounds = array<i64: 1, 32>}, {pipeline_mode = #tpu.pipeline_mode<synchronous>, transform_indices = @transform_2, window_bounds = array<i64: 1, 32>}, {pipeline_mode = #tpu.pipeline_mode<synchronous>, transform_indices = @transform_3, window_bounds = array<i64: 32, 96>}, {pipeline_mode = #tpu.pipeline_mode<synchronous>, transform_indices = @transform_4, window_bounds = array<i64: 1, 96>}, {pipeline_mode = #tpu.pipeline_mode<synchronous>, transform_indices = @transform_5, window_bounds = array<i64: 1, 32>}, {pipeline_mode = #tpu.pipeline_mode<synchronous>, transform_indices = @transform_6, window_bounds = array<i64: 1, 32>}, {pipeline_mode = #tpu.pipeline_mode<synchronous>, transform_indices = @transform_7, window_bounds = array<i64: 32, 64>}, {pipeline_mode = #tpu.pipeline_mode<synchronous>, transform_indices = @transform_8, window_bounds = array<i64: 1, 64>}, {pipeline_mode = #tpu.pipeline_mode<synchronous>, transform_indices = @transform_9, window_bounds = array<i64: 64, 32>}, {pipeline_mode = #tpu.pipeline_mode<synchronous>, transform_indices = @transform_10, window_bounds = array<i64: 1, 32>}, {transform_indices = @transform_11, window_bounds = array<i64: 1, 8, 32>}]} {
    %c0 = arith.constant 0 : index
    %c0_0 = arith.constant 0 : index
    %c0_1 = arith.constant 0 : index
    %0 = vector.load %arg1[%c0, %c0_0, %c0_1] : memref<1x8x32xf32, #tpu.memory_space<vmem>>, vector<1x8x32xf32>
    %1 = vector.shape_cast %0 : vector<1x8x32xf32> to vector<8x32xf32>
    %c0_2 = arith.constant 0 : index
    %c0_3 = arith.constant 0 : index
    %2 = vector.load %arg2[%c0_2, %c0_3] : memref<1x32xf32, #tpu.memory_space<vmem>>, vector<1x32xf32>
    %c0_4 = arith.constant 0 : index
    %c0_5 = arith.constant 0 : index
    %3 = vector.load %arg3[%c0_4, %c0_5] : memref<1x32xf32, #tpu.memory_space<vmem>>, vector<1x32xf32>
    %cst = arith.constant dense<0.000000e+00> : vector<8xf32>
    %4 = vector.multi_reduction <add>, %1, %cst [1] : vector<8x32xf32> to vector<8xf32>
    %5 = vector.shape_cast %4 : vector<8xf32> to vector<8x1xf32>
    %cst_6 = arith.constant 3.200000e+01 : f32
    %6 = vector.broadcast %cst_6 : f32 to vector<8x1xf32>
    %7 = arith.divf %5, %6 : vector<8x1xf32>
    %8 = vector.broadcast %7 : vector<8x1xf32> to vector<8x32xf32>
    %9 = arith.subf %1, %8 : vector<8x32xf32>
    %10 = arith.mulf %9, %9 : vector<8x32xf32>
    %cst_7 = arith.constant dense<0.000000e+00> : vector<8xf32>
    %11 = vector.multi_reduction <add>, %10, %cst_7 [1] : vector<8x32xf32> to vector<8xf32>
    %12 = vector.shape_cast %11 : vector<8xf32> to vector<8x1xf32>
    %cst_8 = arith.constant 3.200000e+01 : f32
    %13 = vector.broadcast %cst_8 : f32 to vector<8x1xf32>
    %14 = arith.divf %12, %13 : vector<8x1xf32>
    %15 = vector.broadcast %7 : vector<8x1xf32> to vector<8x32xf32>
    %16 = arith.subf %1, %15 : vector<8x32xf32>
    %cst_9 = arith.constant 9.99999974E-6 : f32
    %17 = vector.broadcast %cst_9 : f32 to vector<8x1xf32>
    %18 = arith.addf %14, %17 : vector<8x1xf32>
    %19 = math.rsqrt %18 : vector<8x1xf32>
    %20 = vector.broadcast %19 : vector<8x1xf32> to vector<8x32xf32>
    %21 = arith.mulf %16, %20 : vector<8x32xf32>
    %22 = vector.broadcast %2 : vector<1x32xf32> to vector<8x32xf32>
    %23 = arith.mulf %21, %22 : vector<8x32xf32>
    %24 = vector.broadcast %3 : vector<1x32xf32> to vector<8x32xf32>
    %25 = arith.addf %23, %24 : vector<8x32xf32>
    %26 = arith.truncf %25 : vector<8x32xf32> to vector<8x32xbf16>
    %c0_10 = arith.constant 0 : index
    %c0_11 = arith.constant 0 : index
    %27 = vector.load %arg4[%c0_10, %c0_11] : memref<32x96xbf16, #tpu.memory_space<vmem>>, vector<32x96xbf16>
    %cst_12 = arith.constant dense<0.000000e+00> : vector<8x96xf32>
    %28 = tpu.matmul %26, %27, %cst_12 {dimension_numbers = #tpu.dot_dimension_numbers<[1], [0], [0], [1], [0, 0, 1, 1], [], []>} : vector<8x32xbf16>, vector<32x96xbf16>, vector<8x96xf32> -> vector<8x96xf32>
    %c0_13 = arith.constant 0 : index
    %c0_14 = arith.constant 0 : index
    %29 = vector.load %arg5[%c0_13, %c0_14] : memref<1x96xf32, #tpu.memory_space<vmem>>, vector<1x96xf32>
    %30 = vector.broadcast %29 : vector<1x96xf32> to vector<8x96xf32>
    %31 = arith.addf %28, %30 : vector<8x96xf32>
    %32 = arith.truncf %31 : vector<8x96xf32> to vector<8x96xbf16>
    %33 = vector.extract_strided_slice %32 {offsets = [0, 0], sizes = [8, 32], strides = [1, 1]} : vector<8x96xbf16> to vector<8x32xbf16>
    %34 = vector.shape_cast %33 : vector<8x32xbf16> to vector<8x4x8xbf16>
    %35 = tpu.transpose %34, [1, 0, 2] : vector<8x4x8xbf16> -> vector<4x8x8xbf16>
    %36 = vector.extract_strided_slice %32 {offsets = [0, 32], sizes = [8, 32], strides = [1, 1]} : vector<8x96xbf16> to vector<8x32xbf16>
    %37 = vector.shape_cast %36 : vector<8x32xbf16> to vector<8x4x8xbf16>
    %38 = tpu.transpose %37, [1, 0, 2] : vector<8x4x8xbf16> -> vector<4x8x8xbf16>
    %39 = vector.extract_strided_slice %32 {offsets = [0, 64], sizes = [8, 32], strides = [1, 1]} : vector<8x96xbf16> to vector<8x32xbf16>
    %40 = vector.shape_cast %39 : vector<8x32xbf16> to vector<8x4x8xbf16>
    %41 = tpu.transpose %40, [1, 0, 2] : vector<8x4x8xbf16> -> vector<4x8x8xbf16>
    "tpu.trace_start"() <{level = 10 : i32, message = "hqd,hkd->hqk"}> : () -> ()
    %cst_15 = arith.constant dense<0.000000e+00> : vector<4x8x8xf32>
    %42 = tpu.matmul %35, %38, %cst_15 {dimension_numbers = #tpu.dot_dimension_numbers<[2], [2], [1], [1], [0, 0, 0, 1, 1, 1], [0], [0]>} : vector<4x8x8xbf16>, vector<4x8x8xbf16>, vector<4x8x8xf32> -> vector<4x8x8xf32>
    "tpu.trace_stop"() : () -> ()
    %cst_16 = arith.constant dense<0xFF800000> : vector<4x8xf32>
    %43 = vector.multi_reduction <maximumf>, %42, %cst_16 [2] : vector<4x8x8xf32> to vector<4x8xf32>
    %44 = vector.shape_cast %43 : vector<4x8xf32> to vector<4x8x1xf32>
    %45 = vector.broadcast %44 : vector<4x8x1xf32> to vector<4x8x8xf32>
    %46 = arith.subf %42, %45 : vector<4x8x8xf32>
    %47 = math.exp %46 : vector<4x8x8xf32>
    %cst_17 = arith.constant dense<0.000000e+00> : vector<4x8xf32>
    %48 = vector.multi_reduction <add>, %47, %cst_17 [2] : vector<4x8x8xf32> to vector<4x8xf32>
    %49 = vector.shape_cast %48 : vector<4x8xf32> to vector<4x8x1xf32>
    %50 = arith.truncf %47 : vector<4x8x8xf32> to vector<4x8x8xbf16>
    "tpu.trace_start"() <{level = 10 : i32, message = "hqk,hkd->hqd"}> : () -> ()
    %cst_18 = arith.constant dense<0.000000e+00> : vector<4x8x8xf32>
    %51 = tpu.matmul %50, %41, %cst_18 {dimension_numbers = #tpu.dot_dimension_numbers<[2], [1], [1], [2], [0, 0, 0, 1, 1, 2], [0], [0]>} : vector<4x8x8xbf16>, vector<4x8x8xbf16>, vector<4x8x8xf32> -> vector<4x8x8xf32>
    "tpu.trace_stop"() : () -> ()
    %52 = tpu.reciprocal %49 {approx = true} : vector<4x8x1xf32> -> vector<4x8x1xf32>
    %53 = vector.broadcast %52 : vector<4x8x1xf32> to vector<4x8x8xf32>
    %54 = arith.mulf %51, %53 : vector<4x8x8xf32>
    %55 = tpu.transpose %54, [1, 0, 2] : vector<4x8x8xf32> -> vector<8x4x8xf32>
    %56 = vector.shape_cast %55 : vector<8x4x8xf32> to vector<8x32xf32>
    %57 = arith.addf %1, %56 : vector<8x32xf32>
    %c0_19 = arith.constant 0 : index
    %c0_20 = arith.constant 0 : index
    %58 = vector.load %arg6[%c0_19, %c0_20] : memref<1x32xf32, #tpu.memory_space<vmem>>, vector<1x32xf32>
    %c0_21 = arith.constant 0 : index
    %c0_22 = arith.constant 0 : index
    %59 = vector.load %arg7[%c0_21, %c0_22] : memref<1x32xf32, #tpu.memory_space<vmem>>, vector<1x32xf32>
    %cst_23 = arith.constant dense<0.000000e+00> : vector<8xf32>
    %60 = vector.multi_reduction <add>, %57, %cst_23 [1] : vector<8x32xf32> to vector<8xf32>
    %61 = vector.shape_cast %60 : vector<8xf32> to vector<8x1xf32>
    %cst_24 = arith.constant 3.200000e+01 : f32
    %62 = vector.broadcast %cst_24 : f32 to vector<8x1xf32>
    %63 = arith.divf %61, %62 : vector<8x1xf32>
    %64 = vector.broadcast %63 : vector<8x1xf32> to vector<8x32xf32>
    %65 = arith.subf %57, %64 : vector<8x32xf32>
    %66 = arith.mulf %65, %65 : vector<8x32xf32>
    %cst_25 = arith.constant dense<0.000000e+00> : vector<8xf32>
    %67 = vector.multi_reduction <add>, %66, %cst_25 [1] : vector<8x32xf32> to vector<8xf32>
    %68 = vector.shape_cast %67 : vector<8xf32> to vector<8x1xf32>
    %cst_26 = arith.constant 3.200000e+01 : f32
    %69 = vector.broadcast %cst_26 : f32 to vector<8x1xf32>
    %70 = arith.divf %68, %69 : vector<8x1xf32>
    %71 = vector.broadcast %63 : vector<8x1xf32> to vector<8x32xf32>
    %72 = arith.subf %57, %71 : vector<8x32xf32>
    %cst_27 = arith.constant 9.99999974E-6 : f32
    %73 = vector.broadcast %cst_27 : f32 to vector<8x1xf32>
    %74 = arith.addf %70, %73 : vector<8x1xf32>
    %75 = math.rsqrt %74 : vector<8x1xf32>
    %76 = vector.broadcast %75 : vector<8x1xf32> to vector<8x32xf32>
    %77 = arith.mulf %72, %76 : vector<8x32xf32>
    %78 = vector.broadcast %58 : vector<1x32xf32> to vector<8x32xf32>
    %79 = arith.mulf %77, %78 : vector<8x32xf32>
    %80 = vector.broadcast %59 : vector<1x32xf32> to vector<8x32xf32>
    %81 = arith.addf %79, %80 : vector<8x32xf32>
    %82 = arith.truncf %81 : vector<8x32xf32> to vector<8x32xbf16>
    %cst_28 = arith.constant 0.000000e+00 : f32
    %83 = vector.broadcast %cst_28 : f32 to vector<8x32xf32>
    %c0_29 = arith.constant 0 : index
    %c0_30 = arith.constant 0 : index
    %84 = vector.load %arg8[%c0_29, %c0_30] : memref<32x64xbf16, #tpu.memory_space<vmem>>, vector<32x64xbf16>
    %cst_31 = arith.constant dense<0.000000e+00> : vector<8x64xf32>
    %85 = tpu.matmul %82, %84, %cst_31 {dimension_numbers = #tpu.dot_dimension_numbers<[1], [0], [0], [1], [0, 0, 1, 1], [], []>} : vector<8x32xbf16>, vector<32x64xbf16>, vector<8x64xf32> -> vector<8x64xf32>
    %c0_32 = arith.constant 0 : index
    %c0_33 = arith.constant 0 : index
    %86 = vector.load %arg9[%c0_32, %c0_33] : memref<1x64xf32, #tpu.memory_space<vmem>>, vector<1x64xf32>
    %87 = vector.broadcast %86 : vector<1x64xf32> to vector<8x64xf32>
    %88 = arith.addf %85, %87 : vector<8x64xf32>
    %cst_34 = arith.constant 0.000000e+00 : f32
    %89 = vector.broadcast %cst_34 : f32 to vector<8x64xf32>
    %90 = arith.maximumf %88, %89 : vector<8x64xf32>
    %91 = arith.truncf %90 : vector<8x64xf32> to vector<8x64xbf16>
    %c0_35 = arith.constant 0 : index
    %c0_36 = arith.constant 0 : index
    %92 = vector.load %arg10[%c0_35, %c0_36] : memref<64x32xbf16, #tpu.memory_space<vmem>>, vector<64x32xbf16>
    %cst_37 = arith.constant dense<0.000000e+00> : vector<8x32xf32>
    %93 = tpu.matmul %91, %92, %cst_37 {dimension_numbers = #tpu.dot_dimension_numbers<[1], [0], [0], [1], [0, 0, 1, 1], [], []>} : vector<8x64xbf16>, vector<64x32xbf16>, vector<8x32xf32> -> vector<8x32xf32>
    %94 = arith.addf %83, %93 : vector<8x32xf32>
    %95 = arith.addf %57, %94 : vector<8x32xf32>
    %c0_38 = arith.constant 0 : index
    %c0_39 = arith.constant 0 : index
    %96 = vector.load %arg11[%c0_38, %c0_39] : memref<1x32xf32, #tpu.memory_space<vmem>>, vector<1x32xf32>
    %97 = vector.broadcast %96 : vector<1x32xf32> to vector<8x32xf32>
    %98 = arith.addf %95, %97 : vector<8x32xf32>
    %c0_40 = arith.constant 0 : index
    %c0_41 = arith.constant 0 : index
    %c0_42 = arith.constant 0 : index
    %99 = vector.load %arg12[%c0_40, %c0_41, %c0_42] : memref<1x8x32xf32, #tpu.memory_space<vmem>>, vector<1x8x32xf32>
    %100 = vector.shape_cast %99 : vector<1x8x32xf32> to vector<8x32xf32>
    %101 = vector.shape_cast %98 : vector<8x32xf32> to vector<1x8x32xf32>
    tpu.vector_store %arg12[%c0_40, %c0_41, %c0_42], %101 {strides = array<i32>} : memref<1x8x32xf32, #tpu.memory_space<vmem>>, vector<1x8x32xf32>,
    return
  }
  func.func @transform_0(%arg0: i32) -> (i32, i32, i32) {
    %c0_i32 = arith.constant 0 : i32
    %c0_i32_0 = arith.constant 0 : i32
    %c0_i32_1 = arith.constant 0 : i32
    return %arg0, %c0_i32, %c0_i32_0 : i32, i32, i32
  }
  func.func @transform_1(%arg0: i32) -> (i32, i32) {
    %c0_i32 = arith.constant 0 : i32
    %c0_i32_0 = arith.constant 0 : i32
    %c0_i32_1 = arith.constant 0 : i32
    return %c0_i32, %c0_i32_0 : i32, i32
  }
  func.func @transform_2(%arg0: i32) -> (i32, i32) {
    %c0_i32 = arith.constant 0 : i32
    %c0_i32_0 = arith.constant 0 : i32
    %c0_i32_1 = arith.constant 0 : i32
    return %c0_i32, %c0_i32_0 : i32, i32
  }
  func.func @transform_3(%arg0: i32) -> (i32, i32) {
    %c0_i32 = arith.constant 0 : i32
    %c0_i32_0 = arith.constant 0 : i32
    %c0_i32_1 = arith.constant 0 : i32
    return %c0_i32, %c0_i32_0 : i32, i32
  }
  func.func @transform_4(%arg0: i32) -> (i32, i32) {
    %c0_i32 = arith.constant 0 : i32
    %c0_i32_0 = arith.constant 0 : i32
    %c0_i32_1 = arith.constant 0 : i32
    return %c0_i32, %c0_i32_0 : i32, i32
  }
  func.func @transform_5(%arg0: i32) -> (i32, i32) {
    %c0_i32 = arith.constant 0 : i32
    %c0_i32_0 = arith.constant 0 : i32
    %c0_i32_1 = arith.constant 0 : i32
    return %c0_i32, %c0_i32_0 : i32, i32
  }
  func.func @transform_6(%arg0: i32) -> (i32, i32) {
    %c0_i32 = arith.constant 0 : i32
    %c0_i32_0 = arith.constant 0 : i32
    %c0_i32_1 = arith.constant 0 : i32
    return %c0_i32, %c0_i32_0 : i32, i32
  }
  func.func @transform_7(%arg0: i32) -> (i32, i32) {
    %c0_i32 = arith.constant 0 : i32
    %c0_i32_0 = arith.constant 0 : i32
    %c0_i32_1 = arith.constant 0 : i32
    return %c0_i32, %c0_i32_0 : i32, i32
  }
  func.func @transform_8(%arg0: i32) -> (i32, i32) {
    %c0_i32 = arith.constant 0 : i32
    %c0_i32_0 = arith.constant 0 : i32
    %c0_i32_1 = arith.constant 0 : i32
    return %c0_i32, %c0_i32_0 : i32, i32
  }
  func.func @transform_9(%arg0: i32) -> (i32, i32) {
    %c0_i32 = arith.constant 0 : i32
    %c0_i32_0 = arith.constant 0 : i32
    %c0_i32_1 = arith.constant 0 : i32
    return %c0_i32, %c0_i32_0 : i32, i32
  }
  func.func @transform_10(%arg0: i32) -> (i32, i32) {
    %c0_i32 = arith.constant 0 : i32
    %c0_i32_0 = arith.constant 0 : i32
    %c0_i32_1 = arith.constant 0 : i32
    return %c0_i32, %c0_i32_0 : i32, i32
  }
  func.func @transform_11(%arg0: i32) -> (i32, i32, i32) {
    %c0_i32 = arith.constant 0 : i32
    %c0_i32_0 = arith.constant 0 : i32
    %c0_i32_1 = arith.constant 0 : i32
    return %arg0, %c0_i32, %c0_i32_0 : i32, i32, i32
  }
}

</mosaic_0001>

<bundles_post_ra>
// kernel: tpu_custom_call.1
= control target key start
LH: loop header
LB: loop body
LE: loop exit
PB: predicated region body
PF: predicated region fallthrough
CT: control target
= control target key end

     0   :  { %s2053_s0 = inlined_call_operand.vmem [shape: f32[2,8,32], index: 0, kind: input, shape index: {}]   ;;  %s2054_s1 = inlined_call_operand.hbm [shape: f32[1,32], index: 1, kind: input, shape index: {}]   ;;  %s2055_s2 = inlined_call_operand.vmem [shape: f32[1,32], index: 2, kind: input, shape index: {}]   ;;  %s2056_s3 = inlined_call_operand.vmem [shape: bf16[32,96], index: 3, kind: input, shape index: {}]   ;;  %s2057_s4 = inlined_call_operand.vmem [shape: f32[1,96], index: 4, kind: input, shape index: {}]   ;;  %s2058_s5 = inlined_call_operand.vmem [shape: f32[1,32], index: 5, kind: input, shape index: {}]   ;;  %s2059_s6 = inlined_call_operand.vmem [shape: f32[1,32], index: 6, kind: input, shape index: {}]   ;;  %s2060_s7 = inlined_call_operand.vmem [shape: bf16[32,64], index: 7, kind: input, shape index: {}]   ;;  %s2061_s8 = inlined_call_operand.vmem [shape: f32[1,64], index: 8, kind: input, shape index: {}]   ;;  %s2062_s9 = inlined_call_operand.vmem [shape: bf16[64,32], index: 9, kind: input, shape index: {}]   ;;  %s2063_s10 = inlined_call_operand.vmem [shape: f32[1,32], index: 10, kind: input, shape index: {}]   ;;  %s2064_s11 = inlined_call_operand.hbm [shape: f32[2,8,32], index: 11, kind: output, shape index: {}]  }
   0x1   :  { %2065 = sst [smem:[#allocation8_spill]] %s2053_s0 }
   0x2   :  { %2066 = sst [smem:[#allocation9_spill]] %s2054_s1 }
   0x3   :  { %16 = vsyncpa [#allocation3], 0 }
   0x4   :  { %17 = vsyncpa [#allocation4], 0 }
   0x5   :  { %19 = vsyncpa [#allocation4 + $0x1], 0  ;;  %s1711_s17 = smov 0   ;;  %s1713_s18 = smov 0  }
   0x6   :  { %s1715_s19 = smov 0   ;;  %s1717_s20 = smov 0  }
   0x7 LB: > { %s1732_s21 = sadd.s32 4294967295, %s1637_s20   ;;  %s1388_s22 = sadd.s32 4294967294, %s1637_s20   ;;  %s1637_s20 = sphi %s1717_s20, %s2074_s20   ;;  %s1633_s19 = sphi %s1715_s19, %s2073_s19   ;;  %s1629_s18 = sphi %s1713_s18, %s2072_s18   ;;  %s1625_s17 = sphi %s1711_s17, %s2071_s17  }
   0x8   : > { %s1736_s23 = sadd.s32 1, %s1637_s20   ;;  %s268_s24 = sadd.s32 1, %s1633_s19 }
   0x9   : > { %s265_s25 = ssub.s32 %s1637_s20, %s1736_s23  ;;  %p278_p0 = scmp.ne.s32.totalorder %s1633_s19, %s1629_s18 }
   0xa   : > { %p266_p1 = scmp.eq.s32.totalorder %s265_s25, 0  ;;  %p279_p2 = scmp.eq.s32.totalorder %s1732_s21, 1 }
   0xb   : > { %p284_p3 = scmp.ne.s32.totalorder %s1629_s18, %s1625_s17  ;;  %p285_p4 = scmp.eq.s32.totalorder %s1388_s22, 1 }
   0xc   : > { %s1747_s26 = scalar_select %p266_p1, %s1633_s19, %s268_s24  }
   0xd   : > { %p1749_p5 = por %p279_p2, %p278_p0  ;;  %p1753_p6 = por %p285_p4, %p284_p3 }
   0xe   : > { %p1389_p7 = scmp.ge.s32.totalorder %s1637_s20, 1  ;;  %p292_p8 = scmp.lt.s32.totalorder %s1637_s20, 3 }
   0xf   : > { %p1465_p9 = scmp.eq.s32.totalorder %s1732_s21, 0  ;;  %s2069_s1 = sld [smem:[#allocation9_spill]] }
  0x10   : > { %p293_p10 = pnand %p1389_p7, %p292_p8  ;;  %s1639_s13 = smov [#allocation2]  }
  0x11   : > { %s306_s14 = sshll.u32 %s1639_s13, 4  ;;  %s307_s14 = int_to_ptr.vmem [resolvable:$true] %s306_s14 }
  0x12   : > { %p1457_p11 = pneg %p293_p10  ;;  %353 = sbr.rel (%p293_p10) target bundleno = 1791 (0x6ff), region = 64 }
  0x14   : > { %p1458_p12 = pnand %p1465_p9, %p1457_p11 }
  0x15   : > { %s304_s12 = sshll.u32 %s2069_s1, 4  ;;  %s305_s12 = int_to_ptr.hbm [resolvable:$true] %s304_s12 }
  0x16   : > { %1460 = dma.hbm_to_vmem [thread:$0]  (!%p1458_p12), %s305_s12, 16, %s307_s14, [#allocation3]  }
  0x17   : > { %1616 = dma.done.wait (%p1465_p9), [#allocation3], 16  }
  0x18   : > { %1618 = vsyncadd (%p1465_p9), [#allocation3], 4294967280  ;;  %p393_p13 = scmp.lt.s32.totalorder %s1732_s21, 1  ;;  %s2070_s0 = sld [smem:[#allocation8_spill]]  ;;  %vm401_vm0 = vcmask 261120   ;;  %v1640_v2 = vmov 32.0  }
  0x19   : > { %1519 = vrcp.f32 %v1640_v2  ;;  %v1444_v14 = vld [vmem:[%s2056_s3 + $0x8] sm:$0xff]  ;;  %v1443_v15 = vld [vmem:[%s2056_s3] sm:$0xff]  ;;  %s1641_s24 = smov 104   ;;  %s1643_s29 = smov 96   ;;  %v1645_v38 = vmov 1983009808  }
  0x1a   : > { %s394_s15 = scalar_select %p393_p13, %s1732_s21, 1  ;;  %469 = vmatpush.bf16.msra.mxu0 %v1444_v14  ;;  %v1512_v25 = vld [vmem:[#allocation2] ss:$0 sm:$0xff]  ;;  %v498_v39 = vunpack.c.l.s4 %v1645_v38  ;;  %v1647_v46 = vmov 1934713408   ;;  %vm507_vm5 = vcmask 1047556  }
  0x1b   : > { %v1513_v28 = vld [vmem:[%s2055_s2] ss:$0 sm:$0xff]  ;;  %s1644_s30 = smov 112   ;;  %s1646_s12 = smov 64   ;;  %v512_v47 = vunpack.c.l.s4 %v1647_v46  ;;  %vm843_vm6 = vcmask 64512   ;;  %vm963_vm7 = vcmask 1043456  }
  0x1c   : > { %s1395_s16 = sshll.u32 %s394_s15, 3  ;;  %v1514_v32 = vld [vmem:[%s2057_s4] ss:$0 sm:$0xff]  ;;  %v1792_v42 = vunpack.c.0.s8 %v498_v39  ;;  %s1648_s13 = smov 16   ;;  %vm1169_vm8 = vcmask 130048   ;;  %vm1171_vm9 = vcmask 195584  }
  0x1d   : > { %v1797_v54 = vunpack.c.0.s8 %v512_v47  ;;  %s1649_s14 = smov 24   ;;  %s1650_s15 = smov 8   ;;  %vm1277_vm13 = vcmask 523264  }
  0x1e   : > { %s396_s25 = scalar_lea.vmem %s2070_s0, %s1395_s16  ;;  %470 = vmatpush.bf16.msra.mxu0 %v1443_v15  ;;  %s1440_s16 = sshll.u32 %s1732_s21, 3 }
  0x1f   : > { %v1768_v0 = vld [vmem:[%s396_s25] sm:$0xff]  ;;  %v1520_v3 = vpop.eup %1519  ;;  %s1642_s25 = smov 120  }
  0x20   : > { %v402_v1 = vsel %vm401_vm0, %v1768_v0, 0.0  ;;  %v406_v4 = vmul.f32 32.0, %v1520_v3  ;;  %vm410_vm1 = vweird.f32 %v1520_v3 }
  0x21   : > { %403 = vadd.xlane.f32.xlu0 %v402_v1 }
  0x22   : > { %v407_v5 = vsub.f32 1.0, %v406_v4 }
  0x24   : > { %v408_v6 = vmul.f32 %v1520_v3, %v407_v5 }
  0x26   : > { %v409_v7 = vadd.f32 %v1520_v3, %v408_v6 }
  0x28   : > { %v1772_v8 = vsel %vm410_vm1, %v1520_v3, %v409_v7 }
  0x94   : > { %v404_v9 = vpop.xlane.xlu0 %403 }
  0x95   : > { %v412_v10 = vmul.f32 %v1772_v8, %v404_v9 }
  0x97   : > { %v413_v11 = vsub.f32 %v1768_v0, %v412_v10 }
  0x99   : > { %v414_v12 = vmul.f32 %v413_v11, %v413_v11 }
  0x9b   : > { %v415_v13 = vsel %vm401_vm0, %v414_v12, 0.0 }
  0x9c   : > { %416 = vadd.xlane.f32.xlu0 %v415_v13 }
 0x10f   : > { %v417_v16 = vpop.xlane.xlu0 %416 }
 0x110   : > { %v418_v17 = vmul.f32 %v417_v16, %v1772_v8 }
 0x112   : > { %v419_v18 = vadd.f32 1e-05, %v418_v17 }
 0x114   : > { %1521 = vrsqrt.f32 %v419_v18  ;;  %vm426_vm3 = vweird.f32 %v419_v18 }
 0x11a   : > { %v1522_v19 = vpop.eup %1521 }
 0x11b   : > { %v421_v20 = vmul.f32 %v1522_v19, %v419_v18  ;;  %vm427_vm2 = vweird.f32 %v1522_v19 }
 0x11c   : > { %vm428_vm4 = vmor %vm426_vm3, %vm427_vm2 }
 0x11d   : > { %v422_v21 = vmul.f32 %v1522_v19, %v421_v20 }
 0x11f   : > { %v423_v22 = vmul.f32 0.5, %v422_v21 }
 0x121   : > { %v424_v23 = vsub.f32 1.5, %v423_v22 }
 0x123   : > { %v425_v24 = vmul.f32 %v1522_v19, %v424_v23 }
 0x125   : > { %v429_v26 = vsel %vm428_vm4, %v1522_v19, %v425_v24 }
 0x126   : > { %v430_v27 = vmul.f32 %v429_v26, %v413_v11 }
 0x128   : > { %v434_v29 = vmul.f32 %v1512_v25, %v430_v27 }
 0x12a   : > { %v438_v30 = vadd.f32 %v1513_v28, %v434_v29 }
 0x12c   : > { %v439_v31 = vpack.c.bf16 %v438_v30, %v438_v30 }
 0x12e   : > { %1404 = vmatmul.msk.bf16.vlgmr.msra.gmra.mxu0 %vm401_vm0, %v439_v31 }
 0x1ab   : > { %v472_v33 = vpop.f32.mrf.mxu0 }
 0x1ac   : > { %v473_v34 = vadd.f32 %v1514_v32, %v472_v33 }
 0x1ae   : > { %v476_v35 = vpack.c.bf16 %v473_v34, %v473_v34 }
 0x1b0   : > { %482 = vrot.lane.b32.xlu2 %v476_v35, %s1641_s24  ;;  %478 = vrot.lane.b32.xlu1 %v476_v35, %s1642_s25  ;;  %v487_v44 = vshrl.u32 %v476_v35, 16  ;;  %s1312_s25 = scalar_lea.hbm %s2064_s11, %s1440_s16 }
 0x1b1   : > { %s1316_s0 = sshll.u32 %s1312_s25, 4  ;;  %s1317_s0 = int_to_ptr.hbm [resolvable:$true] %s1316_s0 }
 0x1b2   : > { %s1585_s1 = sshra.s32 %s1317_s0, 4  ;;  %s1586_s1 = int_to_ptr.hbm [resolvable:$true] %s1585_s1 }
 0x1b3   : > { %v474_v36 = vpop.f32.mrf.mxu0  ;;  %s1587_s22 = scalar_lea.hbm %s1586_s1, 8  ;;  %p1592_p3 = scmp.lt.s32.totalorder %s1586_s1, %s2064_s11 }
 0x1b4   : > { %p1588_p0 = scmp.ne.s32.totalorder %s1586_s1, %s1587_s22 }
 0x1b6   : > { %p1589_p1 = pnand %p1588_p0, %p1749_p5 }
 0x1b8   : > { %599 = vrot.lane.b32.xlu2 %v476_v35, %s1643_s29  ;;  %480 = vrot.lane.b32.xlu1 %v476_v35, %s1644_s30  ;;  %p1590_p2 = pneg %p1589_p1 }
 0x20a   : > { %v483_v37 = vpop.permute.xlu2 %482 }
 0x20b   : > { %605 = vrot.lane.b32.xlu2 %v483_v37, %s1643_s29  ;;  %v494_v50 = vshrl.u32 %v483_v37, 16 }
 0x222   : > { %v479_v40 = vpop.permute.xlu1 %478 }
 0x223   : > { %v488_v41 = vshrl.u32 %v479_v40, 16  ;;  %723 = vrot.lane.b32.xlu2 %v479_v40, %s1646_s12  ;;  %601 = vrot.lane.b32.xlu0 %v479_v40, %s1643_s29  ;;  %v486_v43 = vpack.i.b16 %v479_v40, %v476_v35 }
 0x225   : > { %v489_v45 = vpack.i.b16 %v488_v41, %v487_v44  ;;  %v500_v48 = vperm.slane %v486_v43, %v1792_v42 }
 0x227   : > { %v527_v51 = vperm.slane %v489_v45, %v1792_v42  ;;  %v509_v55 = vrot.slane %v500_v48, 4  ;;  %v600_v45 = vpop.permute.xlu2 %599 }
 0x229   : > { %v535_v58 = vrot.slane %v527_v51, 4 }
 0x22a   : > { %v481_v49 = vpop.permute.xlu1 %480 }
 0x22b   : > { %v492_v52 = vpack.i.b16 %v483_v37, %v481_v49  ;;  %v493_v53 = vshrl.u32 %v481_v49, 16  ;;  %727 = vrot.lane.b32.xlu2 %v483_v37, %s1646_s12  ;;  %603 = vrot.lane.b32.xlu1 %v481_v49, %s1643_s29 }
 0x22d   : > { %v495_v56 = vpack.i.b16 %v494_v50, %v493_v53  ;;  %v505_v57 = vperm.slane %v492_v52, %v1792_v42 }
 0x22f   : > { %v506_v59 = vrot.slane %v505_v57, 4  ;;  %v510_v60 = vsel %vm507_vm5, %v505_v57, %v509_v55  ;;  %v532_v61 = vperm.slane %v495_v56, %v1792_v42 }
 0x230   : > { %v518_v62 = vperm.slane %v510_v60, %v1797_v54 }
 0x231   : > { %v508_v63 = vsel %vm507_vm5, %v506_v59, %v500_v48  ;;  %v533_v1 = vrot.slane %v532_v61, 4  ;;  %v536_v2 = vsel %vm507_vm5, %v532_v61, %v535_v58  ;;  %v610_v48 = vshrl.u32 %v600_v45, 16 }
 0x232   : > { %v514_v3 = vperm.slane %v508_v63, %v1797_v54  ;;  %v521_v4 = vrot.slane %v518_v62, 4  ;;  %v544_v5 = vperm.slane %v536_v2, %v1797_v54 }
 0x233   : > { %v534_v6 = vsel %vm507_vm5, %v533_v1, %v527_v51  ;;  %721 = vrot.lane.b32.xlu1 %v476_v35, %s1646_s12 }
 0x234   : > { %v519_v7 = vrot.slane %v514_v3, 4  ;;  %v522_v9 = vsel %vm507_vm5, 0, %v521_v4  ;;  %v540_v10 = vperm.slane %v534_v6, %v1797_v54  ;;  %v547_v11 = vrot.slane %v544_v5, 4 }
 0x235   : > { %v554_v12 = vrot.slane %v522_v9, 4  ;;  %v549_v13 = vsel %vm507_vm5, %v521_v4, %v514_v3 }
 0x236   : > { %v545_v14 = vrot.slane %v540_v10, 4  ;;  %v548_v15 = vsel %vm507_vm5, 0, %v547_v11  ;;  %v520_v16 = vsel %vm507_vm5, 0, %v519_v7  ;;  %v568_v19 = vsel %vm507_vm5, %v547_v11, %v540_v10 }
 0x237   : > { %v573_v17 = vrot.slane %v548_v15, 4  ;;  %v555_v18 = vsel %vm507_vm5, %v554_v12, %v520_v16  ;;  %v553_v23 = vperm.slane %v549_v13, %v1792_v42  ;;  %v572_v27 = vperm.slane %v568_v19, %v1792_v42 }
 0x238   : > { %v546_v20 = vsel %vm507_vm5, 0, %v545_v14  ;;  %v559_v21 = vperm.slane %v555_v18, %v1792_v42 }
 0x239   : > { %v574_v22 = vsel %vm507_vm5, %v573_v17, %v546_v20 }
 0x23a   : > { %v560_v24 = vrot.slane %v559_v21, 4  ;;  %v578_v25 = vperm.slane %v574_v22, %v1792_v42 }
 0x23b   : > { %725 = vrot.lane.b32.xlu1 %v481_v49, %s1646_s12 }
 0x23c   : > { %v561_v26 = vsel %vm507_vm5, %v560_v24, %v553_v23  ;;  %v579_v28 = vrot.slane %v578_v25, 4 }
 0x23d   : > { %v1825_v29 = vperm.slane %v561_v26, %v1797_v54 }
 0x23e   : > { %v580_v30 = vsel %vm507_vm5, %v579_v28, %v572_v27 }
 0x23f   : > { %v1829_v31 = vperm.slane %v580_v30, %v1797_v54  ;;  %v566_v32 = vrot.slane %v1825_v29, 4  ;;  %v590_v33 = vshrl.u32 %v1825_v29, 16 }
 0x241   : > { %v589_v34 = vpack.i.b16 %v1829_v31, %v1825_v29  ;;  %v591_v35 = vshrl.u32 %v1829_v31, 16  ;;  %v1837_v36 = vsel %vm507_vm5, 0, %v566_v32  ;;  %v585_v37 = vrot.slane %v1829_v31, 4 }
 0x242   : > { %v596_v41 = vshrl.u32 %v1837_v36, 16 }
 0x243   : > { %v1840_v38 = vpack.i.b16 %v591_v35, %v590_v33  ;;  %v1843_v39 = vsel %vm507_vm5, 0, %v585_v37 }
 0x244   : > { %v595_v40 = vpack.i.b16 %v1843_v39, %v1837_v36  ;;  %v597_v43 = vshrl.u32 %v1843_v39, 16 }
 0x246   : > { %v1849_v44 = vpack.i.b16 %v597_v43, %v596_v41 }
 0x265   : > { %v606_v50 = vpop.permute.xlu2 %605 }
 0x266   : > { %v617_v55 = vshrl.u32 %v606_v50, 16 }
 0x27d   : > { %v724_v62 = vpop.permute.xlu2 %723 }
 0x27e   : > { %v733_v13 = vshrl.u32 %v724_v62, 16 }
 0x285   : > { %v728_v30 = vpop.permute.xlu2 %727 }
 0x295   : > { %v602_v46 = vpop.permute.xlu0 %601 }
 0x296   : > { %v611_v47 = vshrl.u32 %v602_v46, 16  ;;  %v609_v49 = vpack.i.b16 %v602_v46, %v600_v45 }
 0x298   : > { %v612_v51 = vpack.i.b16 %v611_v47, %v610_v48  ;;  %v623_v52 = vperm.slane %v609_v49, %v1792_v42  ;;  %v739_v49 = vshrl.u32 %v728_v30, 16 }
 0x29a   : > { %v649_v56 = vperm.slane %v612_v51, %v1792_v42  ;;  %v631_v59 = vrot.slane %v623_v52, 4 }
 0x29c   : > { %v657_v63 = vrot.slane %v649_v56, 4 }
 0x29d   : > { %v604_v53 = vpop.permute.xlu1 %603 }
 0x29e   : > { %v615_v57 = vpack.i.b16 %v606_v50, %v604_v53  ;;  %v616_v58 = vshrl.u32 %v604_v53, 16 }
 0x2a0   : > { %v618_v60 = vpack.i.b16 %v617_v55, %v616_v58  ;;  %v628_v61 = vperm.slane %v615_v57, %v1792_v42 }
 0x2a2   : > { %v629_v1 = vrot.slane %v628_v61, 4  ;;  %v632_v2 = vsel %vm507_vm5, %v628_v61, %v631_v59  ;;  %v654_v3 = vperm.slane %v618_v60, %v1792_v42 }
 0x2a3   : > { %v640_v4 = vperm.slane %v632_v2, %v1797_v54 }
 0x2a4   : > { %v630_v5 = vsel %vm507_vm5, %v629_v1, %v623_v52  ;;  %v655_v6 = vrot.slane %v654_v3, 4  ;;  %v658_v7 = vsel %vm507_vm5, %v654_v3, %v657_v63 }
 0x2a5   : > { %v636_v9 = vperm.slane %v630_v5, %v1797_v54  ;;  %v643_v10 = vrot.slane %v640_v4, 4  ;;  %v666_v11 = vperm.slane %v658_v7, %v1797_v54  ;;  %v722_v12 = vpop.permute.xlu1 %721 }
 0x2a6   : > { %v656_v14 = vsel %vm507_vm5, %v655_v6, %v649_v56  ;;  %v732_v15 = vshrl.u32 %v722_v12, 16  ;;  %v731_v21 = vpack.i.b16 %v724_v62, %v722_v12 }
 0x2a7   : > { %v641_v16 = vrot.slane %v636_v9, 4  ;;  %v644_v17 = vsel %vm507_vm5, 0, %v643_v10  ;;  %v662_v18 = vperm.slane %v656_v14, %v1797_v54  ;;  %v669_v19 = vrot.slane %v666_v11, 4 }
 0x2a8   : > { %v676_v20 = vrot.slane %v644_v17, 4  ;;  %v734_v25 = vpack.i.b16 %v733_v13, %v732_v15  ;;  %v671_v27 = vsel %vm507_vm5, %v643_v10, %v636_v9  ;;  %v745_v35 = vperm.slane %v731_v21, %v1792_v42 }
 0x2a9   : > { %v642_v22 = vsel %vm507_vm5, 0, %v641_v16  ;;  %v667_v23 = vrot.slane %v662_v18, 4  ;;  %v670_v24 = vsel %vm507_vm5, 0, %v669_v19  ;;  %v690_v37 = vsel %vm507_vm5, %v669_v19, %v662_v18 }
 0x2aa   : > { %v695_v26 = vrot.slane %v670_v24, 4  ;;  %v677_v28 = vsel %vm507_vm5, %v676_v20, %v642_v22  ;;  %v771_v43 = vperm.slane %v734_v25, %v1792_v42  ;;  %v675_v46 = vperm.slane %v671_v27, %v1792_v42 }
 0x2ab   : > { %v668_v32 = vsel %vm507_vm5, 0, %v667_v23  ;;  %v681_v33 = vperm.slane %v677_v28, %v1792_v42  ;;  %v694_v53 = vperm.slane %v690_v37, %v1792_v42  ;;  %v753_v56 = vrot.slane %v745_v35, 4 }
 0x2ac   : > { %v696_v41 = vsel %vm507_vm5, %v695_v26, %v668_v32  ;;  %v779_v60 = vrot.slane %v771_v43, 4 }
 0x2ad   : > { %v726_v45 = vpop.permute.xlu1 %725  ;;  %v682_v47 = vrot.slane %v681_v33, 4  ;;  %v700_v48 = vperm.slane %v696_v41, %v1792_v42 }
 0x2ae   : > { %v737_v50 = vpack.i.b16 %v728_v30, %v726_v45  ;;  %v738_v51 = vshrl.u32 %v726_v45, 16 }
 0x2af   : > { %v683_v52 = vsel %vm507_vm5, %v682_v47, %v675_v46  ;;  %v701_v55 = vrot.slane %v700_v48, 4 }
 0x2b0   : > { %v740_v57 = vpack.i.b16 %v739_v49, %v738_v51  ;;  %v750_v58 = vperm.slane %v737_v50, %v1792_v42  ;;  %v687_v59 = vperm.slane %v683_v52, %v1797_v54 }
 0x2b1   : > { %v702_v61 = vsel %vm507_vm5, %v701_v55, %v694_v53 }
 0x2b2   : > { %v751_v62 = vrot.slane %v750_v58, 4  ;;  %v754_v63 = vsel %vm507_vm5, %v750_v58, %v753_v56  ;;  %v776_v1 = vperm.slane %v740_v57, %v1792_v42  ;;  %v706_v2 = vperm.slane %v702_v61, %v1797_v54 }
 0x2b3   : > { %v762_v3 = vperm.slane %v754_v63, %v1797_v54  ;;  %v712_v4 = vshrl.u32 %v687_v59, 16  ;;  %v688_v5 = vrot.slane %v687_v59, 4 }
 0x2b4   : > { %v752_v6 = vsel %vm507_vm5, %v751_v62, %v745_v35  ;;  %v777_v7 = vrot.slane %v776_v1, 4  ;;  %v780_v9 = vsel %vm507_vm5, %v776_v1, %v779_v60  ;;  %v711_v10 = vpack.i.b16 %v706_v2, %v687_v59 }
 0x2b5   : > { %v758_v11 = vperm.slane %v752_v6, %v1797_v54  ;;  %v765_v12 = vrot.slane %v762_v3, 4  ;;  %v788_v13 = vperm.slane %v780_v9, %v1797_v54  ;;  %v713_v14 = vshrl.u32 %v706_v2, 16 }
 0x2b6   : > { %v778_v15 = vsel %vm507_vm5, %v777_v7, %v771_v43  ;;  %v848_v16 = vsel %vm843_vm6, %v711_v10, 0  ;;  %v689_v17 = vsel %vm507_vm5, 0, %v688_v5  ;;  %v707_v18 = vrot.slane %v706_v2, 4 }
 0x2b7   : > { %v763_v19 = vrot.slane %v758_v11, 4  ;;  %v766_v20 = vsel %vm507_vm5, 0, %v765_v12  ;;  %v784_v21 = vperm.slane %v778_v15, %v1797_v54  ;;  %v791_v22 = vrot.slane %v788_v13, 4  ;;  %857 = vmatpush.bf16.xpose.msra.mxu1 %v848_v16 }
 0x2b8   : > { %v798_v23 = vrot.slane %v766_v20, 4  ;;  %v714_v24 = vpack.i.b16 %v713_v14, %v712_v4  ;;  %v708_v25 = vsel %vm507_vm5, 0, %v707_v18  ;;  %v718_v35 = vshrl.u32 %v689_v17, 16 }
 0x2b9   : > { %v764_v26 = vsel %vm507_vm5, 0, %v763_v19  ;;  %v789_v27 = vrot.slane %v784_v21, 4  ;;  %v792_v28 = vsel %vm507_vm5, 0, %v791_v22  ;;  %v717_v30 = vpack.i.b16 %v708_v25, %v689_v17 }
 0x2ba   : > { %v817_v32 = vrot.slane %v792_v28, 4  ;;  %v867_v33 = vsel %vm843_vm6, %v714_v24, 0  ;;  %v719_v37 = vshrl.u32 %v708_v25, 16  ;;  %v793_v45 = vsel %vm507_vm5, %v765_v12, %v758_v11 }
 0x2bb   : > { %876 = vmatpush.bf16.xpose.msra.mxu2 %v867_v33  ;;  %v886_v41 = vsel %vm843_vm6, %v717_v30, 0  ;;  %v790_v43 = vsel %vm507_vm5, 0, %v789_v27  ;;  %v799_v46 = vsel %vm507_vm5, %v798_v23, %v764_v26  ;;  %v812_v49 = vsel %vm507_vm5, %v791_v22, %v784_v21 }
 0x2bc   : > { %895 = vmatpush.bf16.xpose.msra.mxu3 %v886_v41  ;;  %v720_v47 = vpack.i.b16 %v719_v37, %v718_v35  ;;  %v803_v48 = vperm.slane %v799_v46, %v1792_v42  ;;  %v818_v50 = vsel %vm507_vm5, %v817_v32, %v790_v43  ;;  %v797_v53 = vperm.slane %v793_v45, %v1792_v42 }
 0x2bd   : > { %v822_v51 = vperm.slane %v818_v50, %v1792_v42  ;;  %v816_v56 = vperm.slane %v812_v49, %v1792_v42 }
 0x2be   : > { %v905_v52 = vsel %vm843_vm6, %v720_v47, 0  ;;  %1405 = vmatmul.msk.bf16.vlgmr.msra.gmra.mxu1 %vm843_vm6, %v589_v34  ;;  %v804_v55 = vrot.slane %v803_v48, 4 }
 0x2bf   : > { %914 = vmatpush.bf16.xpose.msrb.mxu0 %v905_v52  ;;  %v823_v57 = vrot.slane %v822_v51, 4 }
 0x2c0   : > { %v805_v58 = vsel %vm507_vm5, %v804_v55, %v797_v53 }
 0x2c1   : > { %v809_v59 = vperm.slane %v805_v58, %v1797_v54  ;;  %v824_v60 = vsel %vm507_vm5, %v823_v57, %v816_v56 }
 0x2c2   : > { %1406 = vmatmul.msk.bf16.vlgmr.msra.gmra.mxu2 %vm843_vm6, %v1840_v38  ;;  %v828_v29 = vperm.slane %v824_v60, %v1797_v54 }
 0x2c3   : > { %1407 = vmatmul.msk.bf16.vlgmr.msra.gmra.mxu3 %vm843_vm6, %v595_v40  ;;  %v810_v31 = vrot.slane %v809_v59, 4  ;;  %v834_v61 = vshrl.u32 %v809_v59, 16 }
 0x2c4   : > { %v833_v34 = vpack.i.b16 %v828_v29, %v809_v59  ;;  %v835_v62 = vshrl.u32 %v828_v29, 16  ;;  %v829_v63 = vrot.slane %v828_v29, 4 }
 0x2c5   : > { %v811_v1 = vsel %vm507_vm5, 0, %v810_v31 }
 0x2c6   : > { %1408 = vmatmul.msk.bf16.vlgmr.msrb.gmra.mxu0 %vm843_vm6, %v1849_v44  ;;  %v965_v38 = vsel %vm963_vm7, %v833_v34, 0  ;;  %v836_v2 = vpack.i.b16 %v835_v62, %v834_v61  ;;  %v830_v3 = vsel %vm507_vm5, 0, %v829_v63  ;;  %v840_v39 = vshrl.u32 %v811_v1, 16 }
 0x2c7   : > { %974 = vmatpush.bf16.msrb.mxu1 %v965_v38  ;;  %v839_v36 = vpack.i.b16 %v830_v3, %v811_v1  ;;  %v841_v40 = vshrl.u32 %v830_v3, 16 }
 0x2c8   : > { %v984_v4 = vsel %vm963_vm7, %v836_v2, 0 }
 0x2c9   : > { %993 = vmatpush.bf16.msrb.mxu2 %v984_v4  ;;  %v1003_v5 = vsel %vm963_vm7, %v839_v36, 0  ;;  %v842_v6 = vpack.i.b16 %v841_v40, %v840_v39 }
 0x2ca   : > { %1012 = vmatpush.bf16.msrb.mxu3 %v1003_v5 }
 0x2cb   : > { %v1022_v7 = vsel %vm963_vm7, %v842_v6, 0 }
 0x2cc   : > { %1031 = vmatpush.bf16.msra.mxu0 %v1022_v7 }
 0x33b   : > { %v859_v44 = vpop.f32.mrf.mxu1 }
 0x33c   : > { %v920_v9 = vsel %vm843_vm6, %v859_v44, -inf }
 0x33d   : > { %921 = vmax.xlane.f32.xlu2 %v920_v9 }
 0x343   : > { %v916_v10 = vpop.f32.mrf.mxu0  ;;  %v861_v11 = vpop.f32.mrf.mxu1 }
 0x344   : > { %v929_v19 = vsel %vm843_vm6, %v916_v10, -inf }
 0x345   : > { %v878_v12 = vpop.f32.mrf.mxu2 }
 0x346   : > { %v897_v13 = vpop.f32.mrf.mxu3  ;;  %v923_v14 = vsel %vm843_vm6, %v878_v12, -inf }
 0x347   : > { %924 = vmax.xlane.f32.xlu1 %v923_v14  ;;  %v926_v15 = vsel %vm843_vm6, %v897_v13, -inf }
 0x348   : > { %927 = vmax.xlane.f32.xlu0 %v926_v15 }
 0x34b   : > { %v918_v16 = vpop.f32.mrf.mxu0 }
 0x34d   : > { %v880_v17 = vpop.f32.mrf.mxu2 }
 0x34e   : > { %v899_v18 = vpop.f32.mrf.mxu3 }
 0x350   : > { %930 = vmax.xlane.f32.xlu0 %v929_v19 }
 0x3b0   : > { %v922_v20 = vpop.xlane.xlu2 %921 }
 0x3b1   : > { %v932_v21 = vsub.f32 %v859_v44, %v922_v20 }
 0x3b3   : > { %v936_v22 = vmul.f32 1.442695, %v932_v21 }
 0x3b5   : > { %1523 = vpow2.f32 %v936_v22 }
 0x3ba   : > { %v925_v23 = vpop.xlane.xlu1 %924 }
 0x3bb   : > { %v1524_v24 = vpop.eup %1523  ;;  %v933_v25 = vsub.f32 %v878_v12, %v925_v23  ;;  %v928_v26 = vpop.xlane.xlu0 %927 }
 0x3bc   : > { %v934_v27 = vsub.f32 %v897_v13, %v928_v26  ;;  %v944_v28 = vsel %vm843_vm6, %v1524_v24, 0.0  ;;  %v956_v30 = vpack.c.bf16 %v1524_v24, %v1524_v24 }
 0x3bd   : > { %v938_v32 = vmul.f32 1.442695, %v933_v25  ;;  %945 = vadd.xlane.f32.xlu1 %v944_v28 }
 0x3be   : > { %v940_v33 = vmul.f32 1.442695, %v934_v27  ;;  %1409 = vmatmul.msk.bf16.vlgmr.msrb.gmra.mxu1 %vm843_vm6, %v956_v30 }
 0x3bf   : > { %1525 = vpow2.f32 %v938_v32 }
 0x3c0   : > { %1527 = vpow2.f32 %v940_v33 }
 0x3c3   : > { %v931_v35 = vpop.xlane.xlu0 %930 }
 0x3c4   : > { %v935_v37 = vsub.f32 %v916_v10, %v931_v35 }
 0x3c5   : > { %v1526_v41 = vpop.eup %1525 }
 0x3c6   : > { %v1528_v43 = vpop.eup %1527  ;;  %v942_v45 = vmul.f32 1.442695, %v935_v37  ;;  %v957_v46 = vpack.c.bf16 %v1526_v41, %v1526_v41  ;;  %v947_v51 = vsel %vm843_vm6, %v1526_v41, 0.0 }
 0x3c7   : > { %v950_v47 = vsel %vm843_vm6, %v1528_v43, 0.0  ;;  %v958_v48 = vpack.c.bf16 %v1528_v43, %v1528_v43 }
 0x3c8   : > { %1529 = vpow2.f32 %v942_v45  ;;  %1410 = vmatmul.msk.bf16.vlgmr.msrb.gmra.mxu2 %vm843_vm6, %v957_v46  ;;  %951 = vadd.xlane.f32.xlu2 %v950_v47 }
 0x3c9   : > { %1411 = vmatmul.msk.bf16.vlgmr.msrb.gmra.mxu3 %vm843_vm6, %v958_v48 }
 0x3ce   : > { %v1530_v49 = vpop.eup %1529 }
 0x3cf   : > { %v959_v50 = vpack.c.bf16 %v1530_v49, %v1530_v49  ;;  %v953_v52 = vsel %vm843_vm6, %v1530_v49, 0.0 }
 0x3d0   : > { %948 = vadd.xlane.f32.xlu2 %v947_v51  ;;  %954 = vadd.xlane.f32.xlu0 %v953_v52 }
 0x3d1   : > { %1412 = vmatmul.msk.bf16.vlgmr.msra.gmra.mxu0 %vm843_vm6, %v959_v50 }
 0x430   : > { %v946_v56 = vpop.xlane.xlu1 %945 }
 0x431   : > { %1531 = vrcp.f32 %v946_v56 }
 0x437   : > { %v1532_v60 = vpop.eup %1531 }
 0x43b   : > { %v952_v53 = vpop.xlane.xlu2 %951  ;;  %v976_v55 = vpop.f32.mrf.mxu1 }
 0x43c   : > { %v1041_v29 = vmul.f32 %v1532_v60, %v976_v55 }
 0x43e   : > { %v1048_v1 = vrot.slane %v1041_v29, 4 }
 0x443   : > { %v949_v57 = vpop.xlane.xlu2 %948  ;;  %v978_v58 = vpop.f32.mrf.mxu1 }
 0x444   : > { %1533 = vrcp.f32 %v949_v57  ;;  %v955_v59 = vpop.xlane.xlu0 %954 }
 0x445   : > { %1535 = vrcp.f32 %v952_v53 }
 0x446   : > { %1537 = vrcp.f32 %v955_v59 }
 0x44a   : > { %v1534_v31 = vpop.eup %1533 }
 0x44b   : > { %v995_v34 = vpop.f32.mrf.mxu2  ;;  %v1536_v61 = vpop.eup %1535 }
 0x44c   : > { %v1042_v62 = vmul.f32 %v1534_v31, %v995_v34  ;;  %v1014_v63 = vpop.f32.mrf.mxu3  ;;  %v1538_v2 = vpop.eup %1537 }
 0x44d   : > { %v1043_v38 = vmul.f32 %v1536_v61, %v1014_v63 }
 0x44e   : > { %v1060_v3 = vrot.slane %v1042_v62, 4  ;;  %v1033_v36 = vpop.f32.mrf.mxu0 }
 0x44f   : > { %v1045_v39 = vrot.slane %v1043_v38, 4  ;;  %v1049_v40 = vsel %vm507_vm5, %v1043_v38, %v1048_v1  ;;  %v1044_v4 = vmul.f32 %v1538_v2, %v1033_v36 }
 0x450   : > { %v1057_v5 = vperm.slane %v1049_v40, %v1792_v42 }
 0x451   : > { %v1047_v6 = vsel %vm507_vm5, %v1045_v39, %v1041_v29  ;;  %v1058_v7 = vrot.slane %v1044_v4, 4  ;;  %v1061_v44 = vsel %vm507_vm5, %v1044_v4, %v1060_v3 }
 0x452   : > { %v1053_v9 = vperm.slane %v1047_v6, %v1792_v42  ;;  %v1084_v10 = vrot.slane %v1057_v5, 4  ;;  %v1069_v11 = vperm.slane %v1061_v44, %v1792_v42 }
 0x453   : > { %v1059_v12 = vsel %vm507_vm5, %v1058_v7, %v1042_v62  ;;  %v997_v13 = vpop.f32.mrf.mxu2 }
 0x454   : > { %v1072_v14 = vrot.slane %v1053_v9, 4  ;;  %v1065_v15 = vperm.slane %v1059_v12, %v1792_v42  ;;  %v1082_v16 = vrot.slane %v1069_v11, 4  ;;  %v1085_v17 = vsel %vm507_vm5, %v1069_v11, %v1084_v10  ;;  %v1016_v18 = vpop.f32.mrf.mxu3 }
 0x455   : > { %v1093_v19 = vperm.slane %v1085_v17, %v1797_v54  ;;  %v1446_v17 = vld [vmem:[%s2060_s7 + $0x8] sm:$0xff]  ;;  %v1450_v18 = vld [vmem:[%s2062_s9 + $0x18] sm:$0xff] }
 0x456   : > { %v1070_v20 = vrot.slane %v1065_v15, 4  ;;  %v1073_v21 = vsel %vm507_vm5, %v1065_v15, %v1072_v14  ;;  %v1083_v22 = vsel %vm507_vm5, %v1082_v16, %v1057_v5  ;;  %v1035_v23 = vpop.f32.mrf.mxu0  ;;  %1236 = vmatpush.bf16.msra.mxu1 %v1446_v17  ;;  %1285 = vmatpush.bf16.msra.mxu2 %v1450_v18 }
 0x457   : > { %v1081_v24 = vperm.slane %v1073_v21, %v1797_v54  ;;  %v1089_v25 = vperm.slane %v1083_v22, %v1797_v54  ;;  %v1100_v26 = vrot.slane %v1093_v19, 4  ;;  %v1449_v21 = vld [vmem:[%s2062_s9 + $0x10] sm:$0xff]  ;;  %v1448_v23 = vld [vmem:[%s2062_s9 + $0x8] sm:$0xff] }
 0x458   : > { %v1071_v27 = vsel %vm507_vm5, %v1070_v20, %v1053_v9 }
 0x459   : > { %v1077_v28 = vperm.slane %v1071_v27, %v1797_v54  ;;  %v1096_v30 = vrot.slane %v1081_v24, 4  ;;  %v1098_v32 = vrot.slane %v1089_v25, 4  ;;  %v1101_v33 = vsel %vm507_vm5, 0.0, %v1100_v26 }
 0x45a   : > { %v1113_v35 = vsel %vm507_vm5, %v1100_v26, %v1089_v25  ;;  %v1118_v37 = vrot.slane %v1101_v33, 4  ;;  %1286 = vmatpush.bf16.msra.mxu2 %v1449_v21 }
 0x45b   : > { %v1097_v41 = vsel %vm507_vm5, 0.0, %v1096_v30  ;;  %v1094_v43 = vrot.slane %v1077_v28, 4  ;;  %v1099_v45 = vsel %vm507_vm5, 0.0, %v1098_v32  ;;  %v1102_v46 = vsel %vm507_vm5, %v1096_v30, %v1077_v28  ;;  %v1515_v30 = vld [vmem:[%s2058_s5] ss:$0 sm:$0xff] }
 0x45c   : > { %v1107_v47 = vrot.slane %v1097_v41, 4  ;;  %v1106_v48 = vperm.slane %v1102_v46, %v1792_v42  ;;  %v1117_v49 = vperm.slane %v1113_v35, %v1792_v42  ;;  %v1119_v50 = vsel %vm507_vm5, %v1118_v37, %v1099_v45  ;;  %v1516_v35 = vld [vmem:[%s2059_s6] ss:$0 sm:$0xff] }
 0x45d   : > { %v1095_v51 = vsel %vm507_vm5, 0.0, %v1094_v43  ;;  %v1123_v52 = vperm.slane %v1119_v50, %v1792_v42  ;;  %v1447_v45 = vld [vmem:[%s2062_s9] sm:$0xff] }
 0x45e   : > { %v1108_v53 = vsel %vm507_vm5, %v1107_v47, %v1095_v51  ;;  %v1126_v55 = vrot.slane %v1106_v48, 4  ;;  %v1138_v56 = vrot.slane %v1117_v49, 4  ;;  %1287 = vmatpush.bf16.msra.mxu2 %v1448_v23  ;;  %v1517_v46 = vld [vmem:[%s2061_s8] ss:$0 sm:$0xff] }
 0x45f   : > { %v1112_v57 = vperm.slane %v1108_v53, %v1792_v42  ;;  %v1136_v58 = vrot.slane %v1123_v52, 4 }
 0x460   : > { %v1139_v59 = vsel %vm507_vm5, %v1123_v52, %v1138_v56  ;;  %v1518_v52 = vld [vmem:[%s2063_s10] ss:$0 sm:$0xff] }
 0x461   : > { %v1127_v60 = vsel %vm507_vm5, %v1112_v57, %v1126_v55  ;;  %v1147_v29 = vperm.slane %v1139_v59, %v1797_v54  ;;  %v1124_v31 = vrot.slane %v1112_v57, 4  ;;  %v1137_v34 = vsel %vm507_vm5, %v1136_v58, %v1117_v49 }
 0x462   : > { %v1135_v61 = vperm.slane %v1127_v60, %v1797_v54  ;;  %v1143_v62 = vperm.slane %v1137_v34, %v1797_v54  ;;  %1288 = vmatpush.bf16.msra.mxu2 %v1447_v45 }
 0x463   : > { %v1152_v63 = vrot.slane %v1147_v29, 4  ;;  %v1125_v1 = vsel %vm507_vm5, %v1124_v31, %v1106_v48 }
 0x464   : > { %v1154_v38 = vrot.slane %v1135_v61, 4  ;;  %v1131_v42 = vperm.slane %v1125_v1, %v1797_v54  ;;  %v1148_v2 = vrot.slane %v1143_v62, 4 }
 0x465   : > { %v1153_v3 = vsel %vm507_vm5, %v1152_v63, %v1135_v61 }
 0x466   : > { %1161 = vrot.lane.b32.xlu0 %v1153_v3, %s1648_s13  ;;  %v1155_v36 = vsel %vm507_vm5, %v1147_v29, %v1154_v38  ;;  %v1150_v39 = vrot.slane %v1131_v42, 4  ;;  %v1149_v40 = vsel %vm507_vm5, %v1148_v2, %v1131_v42 }
 0x467   : > { %1165 = vrot.lane.b32.xlu2 %v1155_v36, %s1649_s14  ;;  %s390_s14 = sand.u32 1, %s1629_s18  }
 0x468   : > { %v1151_v4 = vsel %vm507_vm5, %v1143_v62, %v1150_v39  ;;  %s1302_s21 = scalar_lea.sflag [#allocation4], %s390_s14 }
 0x469   : > { %1157 = vrot.lane.b32.xlu1 %v1151_v4, %s1650_s15  ;;  %s1394_s15 = sshll.u32 %s390_s14, 3 }
 0x46a   : > { %s392_s12 = scalar_lea.vmem [#allocation5], %s1394_s15  ;;  %s1591_s15 = scalar_lea.hbm %s2064_s11, 16 }
 0x46b   : > { %s1314_s13 = sshll.u32 %s392_s12, 4  ;;  %p1593_p4 = scmp.lt.s32.totalorder %s1591_s15, %s1587_s22  ;;  %s1315_s13 = int_to_ptr.vmem [resolvable:$true] %s1314_s13 }
 0x46d   : > { %p1594_p7 = por %p1593_p4, %p1592_p3 }
 0x46f   : > { %p1595_p8 = pnand %p1594_p7, %p1590_p2 }
 0x4c1   : > { %v1166_v7 = vpop.permute.xlu2 %1165 }
 0x4d8   : > { %v1162_v54 = vpop.permute.xlu0 %1161 }
 0x4db   : > { %v1158_v5 = vpop.permute.xlu1 %1157 }
 0x4dc   : > { %v1168_v6 = vsel %vm843_vm6, %v1149_v40, %v1158_v5 }
 0x4dd   : > { %v1170_v44 = vsel %vm1169_vm8, %v1168_v6, %v1162_v54 }
 0x4de   : > { %v1172_v9 = vsel %vm1171_vm9, %v1170_v44, %v1166_v7 }
 0x4df   : > { %v1173_v10 = vadd.f32 %v1172_v9, %v1768_v0  ;;  %v1445_v0 = vld [vmem:[%s2060_s7] sm:$0xff] }
 0x4e0   : > { %1237 = vmatpush.bf16.msra.mxu1 %v1445_v0 }
 0x4e1   : > { %v1176_v11 = vsel %vm401_vm0, %v1173_v10, 0.0 }
 0x4e2   : > { %1177 = vadd.xlane.f32.xlu0 %v1176_v11 }
 0x555   : > { %v1178_v12 = vpop.xlane.xlu0 %1177 }
 0x556   : > { %v1179_v13 = vmul.f32 %v1178_v12, %v1772_v8 }
 0x558   : > { %v1180_v14 = vsub.f32 %v1173_v10, %v1179_v13 }
 0x55a   : > { %v1181_v15 = vmul.f32 %v1180_v14, %v1180_v14 }
 0x55c   : > { %v1182_v16 = vsel %vm401_vm0, %v1181_v15, 0.0 }
 0x55d   : > { %1183 = vadd.xlane.f32.xlu1 %v1182_v16 }
 0x5d0   : > { %v1184_v19 = vpop.xlane.xlu1 %1183 }
 0x5d1   : > { %v1185_v20 = vmul.f32 %v1184_v19, %v1772_v8 }
 0x5d3   : > { %v1186_v22 = vadd.f32 1e-05, %v1185_v20 }
 0x5d5   : > { %1539 = vrsqrt.f32 %v1186_v22  ;;  %vm1193_vm11 = vweird.f32 %v1186_v22 }
 0x5db   : > { %v1540_v24 = vpop.eup %1539 }
 0x5dc   : > { %v1188_v25 = vmul.f32 %v1540_v24, %v1186_v22  ;;  %vm1194_vm10 = vweird.f32 %v1540_v24 }
 0x5dd   : > { %vm1195_vm12 = vmor %vm1193_vm11, %vm1194_vm10 }
 0x5de   : > { %v1189_v26 = vmul.f32 %v1540_v24, %v1188_v25 }
 0x5e0   : > { %v1190_v27 = vmul.f32 0.5, %v1189_v26 }
 0x5e2   : > { %v1191_v28 = vsub.f32 1.5, %v1190_v27 }
 0x5e4   : > { %v1192_v8 = vmul.f32 %v1540_v24, %v1191_v28 }
 0x5e6   : > { %v1196_v32 = vsel %vm1195_vm12, %v1540_v24, %v1192_v8 }
 0x5e7   : > { %v1197_v33 = vmul.f32 %v1196_v32, %v1180_v14 }
 0x5e9   : > { %v1201_v37 = vmul.f32 %v1515_v30, %v1197_v33 }
 0x5eb   : > { %v1205_v41 = vadd.f32 %v1516_v35, %v1201_v37 }
 0x5ed   : > { %v1206_v43 = vpack.c.bf16 %v1205_v41, %v1205_v41 }
 0x5ef   : > { %1421 = vmatmul.msk.bf16.vlgmr.msra.gmra.mxu1 %vm401_vm0, %v1206_v43 }
 0x66c   : > { %v1239_v47 = vpop.f32.mrf.mxu1 }
 0x66d   : > { %v1240_v48 = vadd.f32 %v1517_v46, %v1239_v47 }
 0x66f   : > { %v1243_v49 = vmax.f32 %v1240_v48, 0.0 }
 0x671   : > { %v1244_v50 = vpack.c.bf16 %v1243_v49, %v1243_v49 }
 0x673   : > { %1438 = vmatmul.msk.bf16.vlgmr.msra.gmra.mxu2 %vm1277_vm13, %v1244_v50 }
 0x674   : > { %v1241_v51 = vpop.f32.mrf.mxu1 }
 0x6f6   : > { %v1290_v53 = vpop.f32.mrf.mxu2 }
 0x6f7   : > { %v1294_v55 = vadd.f32 %v1290_v53, %v1173_v10 }
 0x6f9   : > { %v1299_v56 = vadd.f32 %v1518_v52, %v1294_v55 }
 0x6fb   : > { %1300 = vst.msk [vmem:[%s392_s12] sm:$0xff] %vm401_vm0, %v1299_v56 }
 0x6fc   : > { %1598 = shalt.err (!%p1595_p8)
}
 0x6fd   : > { %1455 = dma.vmem_to_hbm [thread:$0]  (%p1749_p5), %s1315_s13, 128, %s1317_s0, %s1302_s21  }
 0x6fe   : > { %v1292_v57 = vpop.f32.mrf.mxu2 }
 0x6ff PF: > { %p1467_p9 = scmp.ge.s32.totalorder %s1637_s20, 2  ;;  %s1328_s14 = sand.u32 1, %s1625_s17  }
 0x700   : > { %s1329_s30 = scalar_lea.sflag [#allocation4], %s1328_s14 }
 0x701   : > { %p1462_p10 = pnand %p1467_p9, %p1753_p6 }
 0x703   : > { %p1463_p11 = pneg %p1462_p10 }
 0x705   : > { %1620 = dma.done.wait (%p1463_p11), %s1329_s30, 128  }
 0x706   : > { %1622 = vsyncadd (%p1463_p11), %s1329_s30, 4294967168  ;;  %p22_p12 = scmp.ge.s32.totalorder %s1736_s23, 4   ;;  %s2071_s17 = smov %s1629_s18 }
 0x707   : > { %s2072_s18 = smov %s1633_s19  ;;  %s2073_s19 = smov %s1747_s26 }
 0x708   : > { %s2074_s20 = smov %s1736_s23  ;;  %24 = sbr.rel (!%p22_p12) target bundleno = 7 (0x7), region = 104 }
 0x70d   :  { %1335 = vsyncpa [#allocation3], 1 }
 0x70e   :  { %1337 = vsyncpa [#allocation3 + $0x1], 1 }
 0x70f   :  { %1338 = vsyncpa [#allocation4], 1 }
 0x710   :  { %1340 = vsyncpa [#allocation4 + $0x1], 1 }

</bundles_post_ra>
